<compile_context>
chip_gen: v6e
topology: v6e:2x2x1
jax: 0.10.0
libtpu: 0.0.40
codegen_flags: <defaults>
</compile_context>

<pallas_src>
import jax
import jax.numpy as jnp
from jax.experimental import pallas as pl
from jax.experimental.pallas import tpu as pltpu


def _pinet_forward_kernel(trv_ref, out_ref):
    # Identity pass-through: the abstract forward defines no body.
    # A concrete subclass would replace this with its real compute, e.g. a
    # fused (TILE_B, H) x (H, H_out) matmul with a float32 VMEM accumulator
    # (K axis last in the grid, marked "arbitrary").
    out_ref[...] = trv_ref[...]


def _pick_batch_tile(B: int, H: int, itemsize: int) -> int:
    """Largest batch tile that evenly divides B and keeps one (tile, H) block
    around ~4 MiB, so 2 input + 2 output double-buffers stay well under the
    v7x 64 MiB VMEM (32 MiB scoped default)."""
    budget_bytes = 4 * 1024 * 1024
    target = max(8, budget_bytes // max(1, H * itemsize))
    target = min(target, 1024)
    if B <= target:
        return B  # full-array block (always a legal block shape)
    tile = (target // 8) * 8  # keep sublane-aligned (f32: multiple of 8)
    while tile >= 8:
        if B % tile == 0:
            return tile
        tile -= 8
    return B  # no aligned divisor: fall back to full-array block


def pinet_forward(trv: jax.Array, t: jax.Array) -> jax.Array:
    """Pallas wrapper mirroring PiNet.forward(trv, t).

    `t` is part of the interface but unused by the (abstract) forward, so it
    is deliberately kept off-chip — no VMEM DMA, no dead vector load.
    """
    del t  # TODO(synk): feed t via SMEM / scalar prefetch once a concrete subclass uses it.
    B, H = trv.shape
    tile_b = _pick_batch_tile(B, H, trv.dtype.itemsize)
    grid = (B // tile_b,)

    return pl.pallas_call(
        _pinet_forward_kernel,
        out_shape=jax.ShapeDtypeStruct((B, H), trv.dtype),
        grid_spec=pl.GridSpec(
            grid=grid,
            in_specs=[pl.BlockSpec((tile_b, H), lambda i: (i, 0))],
            out_specs=pl.BlockSpec((tile_b, H), lambda i: (i, 0)),
        ),
        # Identity forward: alias the output onto the trv buffer so there is no
        # separate HBM output allocation for the copy.
        input_output_aliases={0: 0},
        compiler_params=pltpu.CompilerParams(
            # Batch tiles are independent -> shard across both TCs on v7x;
            # neutral (single TC) on v5e/v6e.
            dimension_semantics=("parallel",),
            # Defensive ceiling; safe on v5e/v6e (128 MiB) and v7x (64 MiB).
            vmem_limit_bytes=32 * 1024 * 1024,
        ),
    )(trv)


if __name__ == "__main__":
    key = jax.random.PRNGKey(0)
    k1, k2 = jax.random.split(key)

    # Small but TPU-friendly demo shapes: batch multiple of 8 (f32 sublanes),
    # hidden = 128 so the output is lane-dense (no masked stores).
    B, H = 8, 128
    trv = jax.random.normal(k1, (B, H), dtype=jnp.float32)
    t = jax.random.uniform(k2, (B, 1), dtype=jnp.float32)

    fwd = jax.jit(pinet_forward)
    out = fwd(trv, t)
    jax.block_until_ready(out)

    # Identity semantics check (the only semantics the abstract base defines).
    assert out.shape == trv.shape and out.dtype == trv.dtype
    assert bool(jnp.allclose(out, trv))

    print("KERNEL_OK")
</pallas_src>

<mosaic_0001>
module attributes {stable_mosaic.version = 11 : i64} {
  func.func @_pinet_forward_kernel(%arg0: i32, %arg1: memref<8x128xf32, #tpu.memory_space<vmem>>, %arg2: memref<8x128xf32, #tpu.memory_space<vmem>>) attributes {dimension_semantics = [#tpu.dimension_semantics<parallel>], iteration_bounds = array<i64: 1>, scalar_prefetch = 0 : i64, scratch_operands = 0 : i64, tpu.core_type = #tpu.core_type<tc>, window_params = [{transform_indices = @transform_0, window_bounds = array<i64: 8, 128>}, {transform_indices = @transform_1, window_bounds = array<i64: 8, 128>}]} {
    %c0 = arith.constant 0 : index
    %c0_0 = arith.constant 0 : index
    %0 = vector.load %arg1[%c0, %c0_0] : memref<8x128xf32, #tpu.memory_space<vmem>>, vector<8x128xf32>
    %c0_1 = arith.constant 0 : index
    %c0_2 = arith.constant 0 : index
    %1 = vector.load %arg2[%c0_1, %c0_2] : memref<8x128xf32, #tpu.memory_space<vmem>>, vector<8x128xf32>
    tpu.vector_store %arg2[%c0_1, %c0_2], %0 {strides = array<i32>} : memref<8x128xf32, #tpu.memory_space<vmem>>, vector<8x128xf32>,
    return
  }
  func.func @transform_0(%arg0: i32) -> (i32, i32) {
    %c0_i32 = arith.constant 0 : i32
    %c0_i32_0 = arith.constant 0 : i32
    return %arg0, %c0_i32 : i32, i32
  }
  func.func @transform_1(%arg0: i32) -> (i32, i32) {
    %c0_i32 = arith.constant 0 : i32
    %c0_i32_0 = arith.constant 0 : i32
    return %arg0, %c0_i32 : i32, i32
  }
}

</mosaic_0001>

<bundles_post_ra>
// kernel: pinet_forward.1
= control target key start
LH: loop header
LB: loop body
LE: loop exit
PB: predicated region body
PF: predicated region fallthrough
CT: control target
= control target key end

     0   :  { %6 = vsyncpa [#allocation3], 0  ;;  %s102_s0 = inlined_call_operand.hbm [shape: f32[8,128], index: 0, kind: input, shape index: {}, may-alias: {0,1}]   ;;  %s103_s1 = inlined_call_operand.hbm [shape: f32[8,128], index: 1, kind: output, shape index: {}, may-alias: {0,1}]  }
   0x1   :  { %7 = vsyncpa [#allocation4], 0  ;;  %s84_s6 = smov [#allocation2]  }
   0x2   :  { %s14_s7 = sshll.u32 %s84_s6, 4  ;;  %s15_s7 = int_to_ptr.vmem [resolvable:$true] %s14_s7 }
   0x3   :  { %s48_s8 = scalar_lea.vmem %s15_s7, 128  ;;  %p53_p1 = scmp.lt.s32.totalorder %s15_s7, %s15_s7 }
   0x4   :  { %p49_p0 = scmp.ne.s32.totalorder %s15_s7, %s48_s8  ;;  %p54_p2 = scmp.lt.s32.totalorder %s48_s8, %s48_s8 }
   0x6   :  { %p55_p3 = por %p54_p2, %p53_p1 }
   0x8   :  { %p56_p4 = pnand %p55_p3, %p49_p0 }
   0xa   :  { %59 = shalt.err (!%p56_p4)
}
   0xb   :  { %17 = dma.hbm_to_vmem [thread:$0]  %s102_s0, 128, %s15_s7, [#allocation3]  }
   0xc   :  { %80 = dma.done.wait [#allocation3], 128  }
   0xd   :  { %81 = vsyncadd [#allocation3], 4294967168  ;;  %s85_s11 = smov [#allocation5]   ;;  %v21_v0 = vld [vmem:[#allocation2] sm:$0xff] }
   0xe   :  { %s29_s12 = sshll.u32 %s85_s11, 4  ;;  %22 = vst [vmem:[#allocation5] sm:$0xff] %v21_v0  ;;  %s30_s12 = int_to_ptr.vmem [resolvable:$true] %s29_s12 }
   0xf   :  { %s60_s13 = scalar_lea.vmem %s30_s12, 128  ;;  %p65_p6 = scmp.lt.s32.totalorder %s30_s12, %s30_s12 }
  0x10   :  { %p61_p5 = scmp.ne.s32.totalorder %s30_s12, %s60_s13  ;;  %p66_p7 = scmp.lt.s32.totalorder %s60_s13, %s60_s13 }
  0x12   :  { %p67_p8 = por %p66_p7, %p65_p6 }
  0x14   :  { %p68_p9 = pnand %p67_p8, %p61_p5 }
  0x16   :  { %71 = shalt.err (!%p68_p9)
}
  0x17   :  { %32 = dma.vmem_to_hbm [thread:$0]  %s30_s12, 128, %s103_s1, [#allocation4]  }
  0x18   :  { %82 = dma.done.wait [#allocation4], 128  }
  0x19   :  { %83 = vsyncadd [#allocation4], 4294967168 }
  0x1a   :  { %36 = vsyncpa [#allocation3], 1 }
  0x1b   :  { %37 = vsyncpa [#allocation4], 1 }

</bundles_post_ra>
